<compile_context>
chip_gen: v7x
topology: tpu7x:2x2x1
jax: 0.10.0
libtpu: 0.0.40
codegen_flags: <defaults>
</compile_context>

<pallas_src>
import functools

import numpy as np
import jax
import jax.numpy as jnp
from jax.experimental import pallas as pl
from jax.experimental.pallas import tpu as pltpu


def _hswish_like(t):
    # t * clamp(t + 3, 0, 6) / 6   (same op sequence as the PyTorch module)
    return t * jnp.clip(t + 3.0, 0.0, 6.0) / 6.0


def _fused_kernel(xp_ref, w1c_ref, w2p_ref, b1c_ref, b2c_ref, out_ref, *, c_in):
    # xp_ref : (C_in, NC, M)  input replicated per output row, placed on the
    #                         conv1-interior lanes (zeros elsewhere)
    # w1c_ref: (C_in, NC, 1)  conv1 weight per (input channel, output row)
    # w2p_ref: (C_in, NC, M)  conv2 valid taps per row, aligned with xp lanes
    # b1c_ref: (NC, 1)        conv1 bias per output row
    # b2c_ref: (NC, 1)        conv2 bias per output row
    # out_ref: (NC, M)        packed output block -> single store
    acc1 = w1c_ref[0] * xp_ref[0]          # conv1 contributions, (NC, M)
    acc2 = w2p_ref[0] * xp_ref[0]          # conv2 tap products,  (NC, M)
    for i in range(1, c_in):               # C_in = 3 -> 2 more fused steps
        xi = xp_ref[i]
        acc1 = acc1 + w1c_ref[i] * xi
        acc2 = acc2 + w2p_ref[i] * xi

    t1 = acc1 + b1c_ref[...]                                    # full conv1 map (border = b1)
    v1 = jnp.sum(acc2, axis=1, keepdims=True) + b2c_ref[...]    # conv2 output, (NC, 1)

    out_ref[...] = _hswish_like(v1) + _hswish_like(t1)          # broadcast add, ONE store


def model_forward(x, w1, b1, w2, b2):
    """x: (N, C, H, W) f32 NCHW; w1: (C, C, 1, 1); b1: (C,); w2: (C, C, 1, 5); b2: (C,)."""
    N, C, H, W = x.shape
    KW = w2.shape[-1]
    if not (H == 1 and W == 3 and KW == 5 and w2.shape[2] == 1):
        raise ValueError(
            "forward is only broadcast-valid for H=1, W=3 with a (1,5) conv2 "
            f"kernel; got H={H}, W={W}, KW={KW}")

    OH, OW = H + 2, W + 2          # broadcast result spatial = conv1 output (3, 5)
    M = OH * OW                    # 15 lanes per (n, o) output row
    NC = N * C
    lpad = OW + 1                  # first conv1-interior lane (h=1, w=1) -> 6
    rpad = M - lpad - W            # 6

    # --- tiny per-row operand prep (one fused XLA chain, a few KB total) ---
    # input replicated per output channel, placed on the interior lanes
    xt = jnp.transpose(x[:, :, 0, :], (1, 0, 2))              # (C_in, N, W)
    xrep = jnp.repeat(xt, C, axis=1)                          # (C_in, NC, W)
    xp = jnp.pad(xrep, ((0, 0), (0, 0), (lpad, rpad)))        # (C_in, NC, M)

    # conv1 weights per (input channel, output row)
    w1c = jnp.tile(jnp.transpose(w1[:, :, 0, 0])[:, :, None], (1, N, 1))   # (C_in, NC, 1)

    # conv2: only taps kw = 1..3 touch real input (the others hit zero padding)
    w2mid = jnp.transpose(w2[:, :, 0, 1:1 + W], (1, 0, 2))    # (C_in, C_out, W)
    w2p = jnp.pad(jnp.tile(w2mid, (1, N, 1)),
                  ((0, 0), (0, 0), (lpad, rpad)))             # (C_in, NC, M)

    b1c = jnp.tile(b1, N)[:, None]                            # (NC, 1)
    b2c = jnp.tile(b2, N)[:, None]                            # (NC, 1)

    kernel = functools.partial(_fused_kernel, c_in=C)
    out2d = pl.pallas_call(
        kernel,
        out_shape=jax.ShapeDtypeStruct((NC, M), jnp.float32),
        in_specs=[pl.BlockSpec(memory_space=pltpu.MemorySpace.VMEM)] * 5,
        out_specs=pl.BlockSpec(memory_space=pltpu.MemorySpace.VMEM),
    )(xp, w1c, w2p, b1c, b2c)

    # free row-major reshape back to NCHW
    return out2d.reshape(N, C, OH, OW)


if __name__ == "__main__":
    key = jax.random.PRNGKey(0)
    k1, k2, k3, k4, k5 = jax.random.split(key, 5)

    N, C, H, W, KW = 2, 3, 1, 3, 5
    x  = jax.random.normal(k1, (N, C, H, W), dtype=jnp.float32)
    w1 = jax.random.normal(k2, (C, C, 1, 1), dtype=jnp.float32) * 0.5
    b1 = jax.random.normal(k3, (C,), dtype=jnp.float32) * 0.1
    w2 = jax.random.normal(k4, (C, C, 1, KW), dtype=jnp.float32) * 0.5
    b2 = jax.random.normal(k5, (C,), dtype=jnp.float32) * 0.1

    out = jax.block_until_ready(model_forward(x, w1, b1, w2, b2))

    # Pure-numpy reference (same math as the PyTorch module).
    xn, w1n, b1n = np.asarray(x), np.asarray(w1), np.asarray(b1)
    w2n, b2n = np.asarray(w2), np.asarray(b2)
    xp1 = np.pad(xn, ((0, 0), (0, 0), (1, 1), (1, 1)))
    t1 = np.einsum('oi,nihw->nohw', w1n[:, :, 0, 0], xp1) + b1n[None, :, None, None]
    xp2 = np.pad(xn, ((0, 0), (0, 0), (0, 0), (1, 1)))
    W2o = W + 2 - KW + 1
    v1 = np.zeros((N, C, H, W2o), np.float32) + b2n[None, :, None, None]
    for kw in range(KW):
        v1 = v1 + np.einsum('oi,nihw->nohw', w2n[:, :, 0, kw], xp2[:, :, :, kw:kw + W2o])

    def hs(t):
        return t * np.clip(t + 3.0, 0.0, 6.0) / 6.0

    ref = hs(v1) + hs(t1)   # broadcast (N,C,1,1) + (N,C,3,5)
    assert out.shape == ref.shape, (out.shape, ref.shape)
    assert np.allclose(np.asarray(out), ref, rtol=1e-4, atol=1e-5), "kernel/reference mismatch"
    print("KERNEL_OK")
</pallas_src>

<mosaic_0001>
module attributes {stable_mosaic.version = 11 : i64} {
  func.func @_fused_kernel(%arg0: memref<3x6x15xf32, #tpu.memory_space<vmem>>, %arg1: memref<3x6x1xf32, #tpu.memory_space<vmem>>, %arg2: memref<3x6x15xf32, #tpu.memory_space<vmem>>, %arg3: memref<6x1xf32, #tpu.memory_space<vmem>>, %arg4: memref<6x1xf32, #tpu.memory_space<vmem>>, %arg5: memref<6x15xf32, #tpu.memory_space<vmem>>) attributes {dimension_semantics = [], scalar_prefetch = 0 : i64, scratch_operands = 0 : i64, tpu.core_type = #tpu.core_type<tc>} {
    %c0 = arith.constant 0 : index
    %c0_0 = arith.constant 0 : index
    %c0_1 = arith.constant 0 : index
    %0 = vector.load %arg1[%c0, %c0_0, %c0_1] : memref<3x6x1xf32, #tpu.memory_space<vmem>>, vector<1x6x1xf32>
    %1 = vector.shape_cast %0 : vector<1x6x1xf32> to vector<6x1xf32>
    %c0_2 = arith.constant 0 : index
    %c0_3 = arith.constant 0 : index
    %c0_4 = arith.constant 0 : index
    %2 = vector.load %arg0[%c0_2, %c0_3, %c0_4] : memref<3x6x15xf32, #tpu.memory_space<vmem>>, vector<1x6x15xf32>
    %3 = vector.shape_cast %2 : vector<1x6x15xf32> to vector<6x15xf32>
    %4 = vector.broadcast %1 : vector<6x1xf32> to vector<6x15xf32>
    %5 = arith.mulf %4, %3 : vector<6x15xf32>
    %c0_5 = arith.constant 0 : index
    %c0_6 = arith.constant 0 : index
    %c0_7 = arith.constant 0 : index
    %6 = vector.load %arg2[%c0_5, %c0_6, %c0_7] : memref<3x6x15xf32, #tpu.memory_space<vmem>>, vector<1x6x15xf32>
    %7 = vector.shape_cast %6 : vector<1x6x15xf32> to vector<6x15xf32>
    %c0_8 = arith.constant 0 : index
    %c0_9 = arith.constant 0 : index
    %c0_10 = arith.constant 0 : index
    %8 = vector.load %arg0[%c0_8, %c0_9, %c0_10] : memref<3x6x15xf32, #tpu.memory_space<vmem>>, vector<1x6x15xf32>
    %9 = vector.shape_cast %8 : vector<1x6x15xf32> to vector<6x15xf32>
    %10 = arith.mulf %7, %9 : vector<6x15xf32>
    %c1 = arith.constant 1 : index
    %c0_11 = arith.constant 0 : index
    %c0_12 = arith.constant 0 : index
    %11 = vector.load %arg0[%c1, %c0_11, %c0_12] : memref<3x6x15xf32, #tpu.memory_space<vmem>>, vector<1x6x15xf32>
    %12 = vector.shape_cast %11 : vector<1x6x15xf32> to vector<6x15xf32>
    %c1_13 = arith.constant 1 : index
    %c0_14 = arith.constant 0 : index
    %c0_15 = arith.constant 0 : index
    %13 = vector.load %arg1[%c1_13, %c0_14, %c0_15] : memref<3x6x1xf32, #tpu.memory_space<vmem>>, vector<1x6x1xf32>
    %14 = vector.shape_cast %13 : vector<1x6x1xf32> to vector<6x1xf32>
    %15 = vector.broadcast %14 : vector<6x1xf32> to vector<6x15xf32>
    %16 = arith.mulf %15, %12 : vector<6x15xf32>
    %17 = arith.addf %5, %16 : vector<6x15xf32>
    %c1_16 = arith.constant 1 : index
    %c0_17 = arith.constant 0 : index
    %c0_18 = arith.constant 0 : index
    %18 = vector.load %arg2[%c1_16, %c0_17, %c0_18] : memref<3x6x15xf32, #tpu.memory_space<vmem>>, vector<1x6x15xf32>
    %19 = vector.shape_cast %18 : vector<1x6x15xf32> to vector<6x15xf32>
    %20 = arith.mulf %19, %12 : vector<6x15xf32>
    %21 = arith.addf %10, %20 : vector<6x15xf32>
    %c2 = arith.constant 2 : index
    %c0_19 = arith.constant 0 : index
    %c0_20 = arith.constant 0 : index
    %22 = vector.load %arg0[%c2, %c0_19, %c0_20] : memref<3x6x15xf32, #tpu.memory_space<vmem>>, vector<1x6x15xf32>
    %23 = vector.shape_cast %22 : vector<1x6x15xf32> to vector<6x15xf32>
    %c2_21 = arith.constant 2 : index
    %c0_22 = arith.constant 0 : index
    %c0_23 = arith.constant 0 : index
    %24 = vector.load %arg1[%c2_21, %c0_22, %c0_23] : memref<3x6x1xf32, #tpu.memory_space<vmem>>, vector<1x6x1xf32>
    %25 = vector.shape_cast %24 : vector<1x6x1xf32> to vector<6x1xf32>
    %26 = vector.broadcast %25 : vector<6x1xf32> to vector<6x15xf32>
    %27 = arith.mulf %26, %23 : vector<6x15xf32>
    %28 = arith.addf %17, %27 : vector<6x15xf32>
    %c2_24 = arith.constant 2 : index
    %c0_25 = arith.constant 0 : index
    %c0_26 = arith.constant 0 : index
    %29 = vector.load %arg2[%c2_24, %c0_25, %c0_26] : memref<3x6x15xf32, #tpu.memory_space<vmem>>, vector<1x6x15xf32>
    %30 = vector.shape_cast %29 : vector<1x6x15xf32> to vector<6x15xf32>
    %31 = arith.mulf %30, %23 : vector<6x15xf32>
    %32 = arith.addf %21, %31 : vector<6x15xf32>
    %c0_27 = arith.constant 0 : index
    %c0_28 = arith.constant 0 : index
    %33 = vector.load %arg3[%c0_27, %c0_28] : memref<6x1xf32, #tpu.memory_space<vmem>>, vector<6x1xf32>
    %34 = vector.broadcast %33 : vector<6x1xf32> to vector<6x15xf32>
    %35 = arith.addf %28, %34 : vector<6x15xf32>
    %cst = arith.constant dense<0.000000e+00> : vector<6xf32>
    %36 = vector.multi_reduction <add>, %32, %cst [1] : vector<6x15xf32> to vector<6xf32>
    %37 = vector.shape_cast %36 : vector<6xf32> to vector<6x1xf32>
    %c0_29 = arith.constant 0 : index
    %c0_30 = arith.constant 0 : index
    %38 = vector.load %arg4[%c0_29, %c0_30] : memref<6x1xf32, #tpu.memory_space<vmem>>, vector<6x1xf32>
    %39 = arith.addf %37, %38 : vector<6x1xf32>
    %cst_31 = arith.constant 3.000000e+00 : f32
    %40 = vector.broadcast %cst_31 : f32 to vector<6x1xf32>
    %41 = arith.addf %39, %40 : vector<6x1xf32>
    %cst_32 = arith.constant 0.000000e+00 : f32
    %cst_33 = arith.constant 6.000000e+00 : f32
    %42 = vector.broadcast %cst_32 : f32 to vector<6x1xf32>
    %43 = arith.maximumf %42, %41 : vector<6x1xf32>
    %44 = vector.broadcast %cst_33 : f32 to vector<6x1xf32>
    %45 = arith.minimumf %44, %43 : vector<6x1xf32>
    %46 = arith.mulf %39, %45 : vector<6x1xf32>
    %cst_34 = arith.constant 6.000000e+00 : f32
    %47 = vector.broadcast %cst_34 : f32 to vector<6x1xf32>
    %48 = arith.divf %46, %47 : vector<6x1xf32>
    %cst_35 = arith.constant 3.000000e+00 : f32
    %49 = vector.broadcast %cst_35 : f32 to vector<6x15xf32>
    %50 = arith.addf %35, %49 : vector<6x15xf32>
    %cst_36 = arith.constant 0.000000e+00 : f32
    %cst_37 = arith.constant 6.000000e+00 : f32
    %51 = vector.broadcast %cst_36 : f32 to vector<6x15xf32>
    %52 = arith.maximumf %51, %50 : vector<6x15xf32>
    %53 = vector.broadcast %cst_37 : f32 to vector<6x15xf32>
    %54 = arith.minimumf %53, %52 : vector<6x15xf32>
    %55 = arith.mulf %35, %54 : vector<6x15xf32>
    %cst_38 = arith.constant 6.000000e+00 : f32
    %56 = vector.broadcast %cst_38 : f32 to vector<6x15xf32>
    %57 = arith.divf %55, %56 : vector<6x15xf32>
    %58 = vector.broadcast %48 : vector<6x1xf32> to vector<6x15xf32>
    %59 = arith.addf %58, %57 : vector<6x15xf32>
    %c0_39 = arith.constant 0 : index
    %c0_40 = arith.constant 0 : index
    %60 = vector.load %arg5[%c0_39, %c0_40] : memref<6x15xf32, #tpu.memory_space<vmem>>, vector<6x15xf32>
    tpu.vector_store %arg5[%c0_39, %c0_40], %59 {strides = array<i32>} : memref<6x15xf32, #tpu.memory_space<vmem>>, vector<6x15xf32>,
    return
  }
}

</mosaic_0001>

<bundles_post_ra>
// kernel: tpu_custom_call.1
= control target key start
LH: loop header
LB: loop body
LE: loop exit
PB: predicated region body
PF: predicated region fallthrough
CT: control target
= control target key end

     0   :  { %v140_v10 = vmov 0   ;;  %s219_s0 = inlined_call_operand.vmem [shape: f32[3,6,15], index: 0, kind: input, shape index: {}]   ;;  %s220_s1 = inlined_call_operand.vmem [shape: f32[3,6,1], index: 1, kind: input, shape index: {}]   ;;  %s221_s2 = inlined_call_operand.vmem [shape: f32[3,6,15], index: 2, kind: input, shape index: {}]   ;;  %s222_s3 = inlined_call_operand.vmem [shape: f32[6,1], index: 3, kind: input, shape index: {}]   ;;  %s223_s4 = inlined_call_operand.vmem [shape: f32[6,1], index: 4, kind: input, shape index: {}]   ;;  %s224_s5 = inlined_call_operand.hbm [shape: f32[6,15], index: 5, kind: output, shape index: {}]  }
   0x1   :  { %v22_v0 = vld [vmem:[%s219_s0] sm:$0x3f]  ;;  %v106_v2 = vld [vmem:[%s219_s0 + $0x8] sm:$0x3f]  ;;  %v109_v5 = vld [vmem:[%s219_s0 + $0x10] sm:$0x3f]  ;;  %115 = vset.pattern.permute.xlu1 %v140_v10  ;;  %114 = vset.pattern.permute.xlu0 %v140_v10 }
   0x2   :  { %v29_v1 = vld [vmem:[%s221_s2] sm:$0x3f]  ;;  %v108_v4 = vld [vmem:[%s221_s2 + $0x8] sm:$0x3f]  ;;  %v111_v6 = vld [vmem:[%s221_s2 + $0x10] sm:$0x3f] }
   0x3   :  { %v30_v3 = vmul.f32 %v29_v1, %v22_v0  ;;  %v44_v7 = vmul.f32 %v108_v4, %v106_v2  ;;  %v59_v8 = vmul.f32 %v111_v6, %v109_v5  ;;  %v107_v9 = vld [vmem:[%s220_s1 + $0x8] sm:$0x3f] }
   0x4   :  { %37 = vperm.xlu1 %115, %v107_v9  }
   0x5   :  { %v45_v11 = vadd.f32 %v44_v7, %v30_v3 }
   0x6   :  { %10 = vsyncpa [#allocation3], 0  ;;  %vm68_vm0 = vcmask 119808   ;;  %v110_v12 = vld [vmem:[%s220_s1 + $0x10] sm:$0x3f] }
   0x7   :  { %v60_v13 = vadd.f32 %v59_v8, %v45_v11  ;;  %v61_v15 = vld [vmem:[%s222_s3] sm:$0x3f] }
   0x8   :  { %52 = vperm.xlu1 %115, %v110_v12   ;;  %v21_v16 = vld [vmem:[%s220_s1] sm:$0x3f]  ;;  %s141_s1 = smov [#allocation2]  }
   0x9   :  { %v69_v14 = vsel %vm68_vm0, %v60_v13, 0.0  ;;  %v72_v17 = vld [vmem:[%s223_s4] sm:$0x3f]  ;;  %s98_s3 = sshll.u32 %s141_s1, 4  ;;  %s99_s3 = int_to_ptr.vmem [resolvable:$true] %s98_s3 }
   0xa   :  { %70 = vadd.xlane.f32.xlu0 %v69_v14  ;;  %s116_s4 = scalar_lea.vmem %s99_s3, 128  ;;  %p121_p1 = scmp.lt.s32.totalorder %s99_s3, %s99_s3 }
   0xb   :  { %p117_p0 = scmp.ne.s32.totalorder %s99_s3, %s116_s4  ;;  %p122_p2 = scmp.lt.s32.totalorder %s116_s4, %s116_s4 }
   0xc   :  { %64 = vperm.xlu1 %115, %v61_v15  }
   0xd   :  { %p123_p3 = por %p122_p2, %p121_p1 }
   0xf   :  { %p124_p4 = pnand %p123_p3, %p117_p0 }
  0x20   :  { %25 = vperm.xlu0 %114, %v21_v16  }
  0x83   :  { %v38_v25 = vpop.permute.xlu1 %37 }
  0x84   :  { %v40_v27 = vmul.f32 %v106_v2, %v38_v25 }
  0x87   :  { %v53_v29 = vpop.permute.xlu1 %52 }
  0x88   :  { %v55_v31 = vmul.f32 %v109_v5, %v53_v29 }
  0x8b   :  { %v65_v33 = vpop.permute.xlu1 %64 }
  0x97   :  { %v71_v18 = vpop.xlane.xlu0 %70 }
  0x98   :  { %v73_v19 = vadd.f32 %v72_v17, %v71_v18 }
  0x9a   :  { %v74_v20 = vadd.f32 3.0, %v73_v19 }
  0x9c   :  { %v75_v21 = vmax.f32 %v74_v20, 0.0 }
  0x9e   :  { %v76_v22 = vmin.f32 %v75_v21, 6.0 }
  0x9f   :  { %v26_v26 = vpop.permute.xlu0 %25 }
  0xa0   :  { %v77_v23 = vmul.f32 %v76_v22, %v73_v19  ;;  %v28_v28 = vmul.f32 %v26_v26, %v22_v0 }
  0xa2   :  { %v79_v24 = vmul.f32 0.16666667, %v77_v23  ;;  %v41_v30 = vadd.f32 %v40_v27, %v28_v28 }
  0xa4   :  { %87 = vperm.xlu1 %115, %v79_v24   ;;  %v56_v32 = vadd.f32 %v55_v31, %v41_v30 }
  0xa6   :  { %v67_v34 = vadd.f32 %v65_v33, %v56_v32 }
  0xa8   :  { %v80_v35 = vadd.f32 3.0, %v67_v34 }
  0xaa   :  { %v81_v36 = vmax.f32 %v80_v35, 0.0 }
  0xac   :  { %v82_v37 = vmin.f32 %v81_v36, 6.0 }
  0xae   :  { %v83_v38 = vmul.f32 %v82_v37, %v67_v34 }
  0xb0   :  { %v84_v39 = vmul.f32 0.16666667, %v83_v38 }
 0x123   :  { %v88_v40 = vpop.permute.xlu1 %87 }
 0x124   :  { %v90_v41 = vadd.f32 %v88_v40, %v84_v39 }
 0x126   :  { %91 = vst.msk [vmem:[#allocation2] sm:$0x3f] %vm68_vm0, %v90_v41 }
 0x127   :  { %127 = shalt.err (!%p124_p4)
}
 0x128   :  { %s128_s15 = scalar_lea.hbm %s224_s5, 128 }
 0x129   :  { %p129_p5 = scmp.ne.s32.totalorder %s224_s5, %s128_s15  ;;  %p132_p6 = scmp.lt.u32.totalorder %s128_s15, %s224_s5 }
 0x12b   :  { %p134_p7 = pnand %p132_p6, %p129_p5 }
 0x12d   :  { %137 = shalt.err (!%p134_p7)
}
 0x12e   :  { %101 = dma.vmem_to_hbm [thread:$0]  %s99_s3, 128, %s224_s5, [#allocation3]  }
 0x12f   :  { %138 = dma.done.wait [#allocation3], 128  }
 0x130   :  { %139 = vsyncadd [#allocation3], 4294967168 }
 0x131   :  { %105 = vsyncpa [#allocation3], 1 }

</bundles_post_ra>
